<compile_context>
chip_gen: v6e
topology: v6e:2x2x1
jax: 0.10.0
libtpu: 0.0.40
codegen_flags: <defaults>
</compile_context>

<pallas_src>
import functools
from typing import NamedTuple, Optional

import jax
import jax.numpy as jnp
from jax import lax
from jax.experimental import pallas as pl
from jax.experimental.pallas import tpu as pltpu


def _round_up(x, m):
    return ((x + m - 1) // m) * m


def _default_vmem_cap_bytes():
    """Generation-aware VMEM budget: 3/4 of capacity, capped at 96 MiB.

    v7x (64 MiB physical) -> 48 MiB; v5e/v6e (128 MiB) -> 96 MiB.  Falls back
    to the conservative v7x number if the query is unavailable.
    """
    try:
        cap = int(pltpu.get_tpu_info().vmem_capacity_bytes)
    except Exception:
        cap = 64 << 20
    return max(32 << 20, min(cap * 3 // 4, 96 << 20))


class ClusterMemoryPlan(NamedTuple):
    batch: int
    dim: int
    num_valid: int          # real number of clusters N
    tile_b: int
    b_pad: int
    tile_n: int
    n_split: int            # outer parallel split of the N range (megacore)
    n_pad: int              # padded N (multiple of tile_n * n_split)
    tiles_per_split: int
    feat_buffers: int
    vmem_limit_bytes: int


def plan_cluster_memory(batch, dim, num_samples, *,
                        x_itemsize=4, f_itemsize=4,
                        max_tile_n=None, vmem_cap_bytes=None,
                        feat_buffers=None, split_for_megacore=True):
    """Pick tiling so the bank is streamed as few times as possible.

    Priority: tile_b = whole (padded) batch (bank re-streams = #batch tiles),
    then the largest lane-dense tile_n that keeps the streamed bank tiles,
    resident inputs and the f32 logits slab (+ fused temporaries) inside the
    generation-specific VMEM budget.
    """
    vmem_cap = int(vmem_cap_bytes) if vmem_cap_bytes else _default_vmem_cap_bytes()
    if max_tile_n is None:
        # Small D -> per-tile DMA/compute is tiny, so use very wide tiles to
        # amortize the ~600-cycle per-grid-step overhead.
        max_tile_n = 16384 if dim <= 128 else (8192 if dim <= 512 else 2048)
    max_tile_n = max(128, (int(max_tile_n) // 128) * 128)

    n_lane = _round_up(num_samples, 128)
    b_full = _round_up(batch, 8)

    tile_b = b_full
    while True:
        fbuf = int(feat_buffers) if feat_buffers else 2
        # inputs (double-buffered) + scaled-input scratch + small scratches.
        fixed = 3 * tile_b * dim * x_itemsize + 64 * tile_b + (2 << 20)
        # streamed bank tiles + f32 logits slab and fused temporaries.
        per_n = fbuf * dim * f_itemsize + 5 * tile_b * 4
        avail = vmem_cap - fixed
        cand = 0
        if avail > 0:
            cand = min((avail // per_n) // 128 * 128, max_tile_n, n_lane)
        if cand >= min(512, n_lane, max_tile_n) or tile_b <= 8:
            tile_n = max(int(cand), 128)
            break
        # Only shrink the batch tile when the logits slab cannot fit.
        tile_b = max(8, _round_up(tile_b // 2, 8))

    b_pad = _round_up(b_full, tile_b)

    raw_tiles = -(-num_samples // tile_n)
    n_split = 2 if (split_for_megacore and raw_tiles >= 2) else 1
    n_pad = _round_up(num_samples, tile_n * n_split)
    tiles_per_split = n_pad // (tile_n * n_split)

    fbuf = int(feat_buffers) if feat_buffers else 2
    return ClusterMemoryPlan(batch=int(batch), dim=int(dim),
                             num_valid=int(num_samples),
                             tile_b=int(tile_b), b_pad=int(b_pad),
                             tile_n=int(tile_n), n_split=int(n_split),
                             n_pad=int(n_pad),
                             tiles_per_split=int(tiles_per_split),
                             feat_buffers=int(fbuf),
                             vmem_limit_bytes=int(vmem_cap))


def prepare_feature_bank(features, plan: ClusterMemoryPlan, stream_dtype=None):
    """One-time bank layout prep: (N, D) -> lane-dense (D, n_pad), optional cast.

    Do this once per memory-bank update (or keep the momentum update writing
    directly into this layout); doing it per forward call roughly doubles the
    HBM traffic of the whole loss computation.
    Padded columns are exact zeros (the kernel relies on that).
    """
    assert features.shape == (plan.num_valid, plan.dim)
    ft = features.T
    if stream_dtype is not None:
        ft = ft.astype(stream_dtype)
    if plan.n_pad != plan.num_valid:
        ft = jnp.pad(ft, ((0, 0), (0, plan.n_pad - plan.num_valid)))
    return ft


def _cm_ce_kernel(x_ref, ft_ref, t_ref, lse_ref, tgt_ref,
                  xs_sc, m_sc, s_sc, tgt_sc,
                  *, inv_temp, tile_n, span, num_valid):
    """One grid step: (tile_b, tile_n) slab of logits for (split s, batch tile i).

    logits = (x * inv_temp) @ bank_t on the MXU (f32 accumulation), folded into
    an online logsumexp plus a target-logit gather, so the (B, N) logits matrix
    never materializes in HBM.  Grid = (n_split ["parallel"],
    batch tiles ["parallel"], N tiles per split ["arbitrary" reduction]).
    """
    s_idx = pl.program_id(0)
    j = pl.program_id(2)

    @pl.when(j == 0)
    def _init():
        # One-time per (split, batch tile): temperature-scale resident inputs
        # in their own stream dtype (exact for f32; ~1 ulp extra for bf16).
        # Exact identity: (x * c) @ f == c * (x @ f).
        xs_sc[...] = (x_ref[...] * inv_temp).astype(xs_sc.dtype)
        m_sc[...] = jnp.full_like(m_sc, -3.0e38)
        s_sc[...] = jnp.zeros_like(s_sc)
        tgt_sc[...] = jnp.zeros_like(tgt_sc)

    # (tile_b, D) @ (D, tile_n): lane-dense MXU feed, no in-kernel transpose.
    logits = jnp.dot(xs_sc[...], ft_ref[...], preferred_element_type=jnp.float32)

    # (1, tile_n) iota broadcast against (tile_b, 1) targets: no int32 slab.
    col0 = (s_idx * pl.num_programs(2) + j) * tile_n
    col_ids = col0 + lax.broadcasted_iota(jnp.int32, (1, tile_n), 1)

    # Target-class logit (padded columns have ids >= N and never match).
    # NOTE: out-of-range / negative targets silently yield a 0 target logit
    # (finite but wrong loss); PyTorch CrossEntropyLoss would raise instead.
    tgt_sc[...] += jnp.sum(jnp.where(col_ids == t_ref[...], logits, 0.0),
                           axis=-1, keepdims=True)

    # Online logsumexp across this split's N tiles.  Padded bank columns are
    # exact zero vectors -> logit exactly 0.0; they may raise the running max
    # (harmless shift) and their sum-exp contribution is removed analytically
    # at finalize, so NO per-logit mask is needed in this hot loop.
    m_prev = m_sc[...]
    m_new = jnp.maximum(m_prev, jnp.max(logits, axis=-1, keepdims=True))
    s_sc[...] = (s_sc[...] * jnp.exp(m_prev - m_new)
                 + jnp.sum(jnp.exp(logits - m_new), axis=-1, keepdims=True))
    m_sc[...] = m_new

    @pl.when(j == pl.num_programs(2) - 1)
    def _finalize():
        # Number of real (non-padded) columns handled by this split.
        valid_here = jnp.clip(num_valid - s_idx * span, 0, span)
        pad_cnt = (span - valid_here).astype(jnp.float32)
        m = m_sc[...]
        # Each padded column contributed exp(0 - m); subtract them all.
        # (If pad_cnt > 0 then m >= 0, so the clamp never changes the value;
        #  it only guards exp overflow when pad_cnt == 0.)
        s = s_sc[...] - pad_cnt * jnp.exp(jnp.minimum(-m, 60.0))
        s = jnp.maximum(s, 1e-37)
        lse_ref[0] = m + jnp.log(s)          # partial logsumexp of this split
        tgt_ref[0] = tgt_sc[...]             # partial target logit (0 or real)


def cluster_memory_forward(inputs, targets, features=None, temp=0.05, *,
                           plan: Optional[ClusterMemoryPlan] = None,
                           bank_t=None, stream_dtype=None,
                           max_tile_n=None, vmem_cap_bytes=None,
                           feat_buffers=None):
    """Pallas implementation of ClusterMemory.forward for mode 'CM'/'CMhard'.

    inputs:   (B, D) instance features (f32 or bf16)
    targets:  (B,)   int cluster indices in [0, N)
    features: (N, D) memory bank (raw layout; convenience path), OR pass
              plan= + bank_t= from plan_cluster_memory / prepare_feature_bank
              to skip the per-call transpose/pad of the bank.
    stream_dtype: optionally cast the streamed operands (e.g. jnp.bfloat16)
              to halve HBM traffic; accumulation stays f32.
    """
    B, D = inputs.shape
    x = inputs if stream_dtype is None else inputs.astype(stream_dtype)

    if plan is None:
        assert features is not None, "need either `features` or `plan`+`bank_t`"
        N = features.shape[0]
        f_dt = stream_dtype if stream_dtype is not None else features.dtype
        plan = plan_cluster_memory(
            B, D, N,
            x_itemsize=jnp.dtype(x.dtype).itemsize,
            f_itemsize=jnp.dtype(f_dt).itemsize,
            max_tile_n=max_tile_n, vmem_cap_bytes=vmem_cap_bytes,
            feat_buffers=feat_buffers)
    assert plan.batch == B and plan.dim == D

    if bank_t is None:
        assert features is not None
        # Per-call prep re-reads/writes the whole bank; prefer preparing once.
        bank_t = prepare_feature_bank(features, plan, stream_dtype)
    assert bank_t.shape == (D, plan.n_pad)

    t2d = targets.astype(jnp.int32).reshape(B, 1)
    if plan.b_pad != B:
        x = jnp.pad(x, ((0, plan.b_pad - B), (0, 0)))
        t2d = jnp.pad(t2d, ((0, plan.b_pad - B), (0, 0)))

    tile_b, tile_n = plan.tile_b, plan.tile_n
    tps = plan.tiles_per_split
    span = tps * tile_n                       # columns handled by each split
    grid = (plan.n_split, plan.b_pad // tile_b, tps)

    feat_spec_kwargs = {}
    if plan.feat_buffers != 2:
        # Optional deeper pipelining of the bank stream (sweep 2 vs 3 on HW).
        feat_spec_kwargs["pipeline_mode"] = pl.Buffered(plan.feat_buffers)

    kernel = functools.partial(_cm_ce_kernel,
                               inv_temp=float(1.0 / temp),
                               tile_n=tile_n, span=span,
                               num_valid=plan.num_valid)

    lse_part, tgt_part = pl.pallas_call(
        kernel,
        out_shape=(jax.ShapeDtypeStruct((plan.n_split, plan.b_pad, 1), jnp.float32),
                   jax.ShapeDtypeStruct((plan.n_split, plan.b_pad, 1), jnp.float32)),
        grid_spec=pltpu.PrefetchScalarGridSpec(
            num_scalar_prefetch=0,
            grid=grid,
            in_specs=[
                # inputs: resident per batch tile, re-used across all N tiles.
                pl.BlockSpec((tile_b, D), lambda s, i, j: (i, 0)),
                # feature bank: streamed lane-dense (D, tile_n) tiles; each
                # split s walks its own half of the padded bank.
                pl.BlockSpec((D, tile_n),
                             lambda s, i, j, tps=tps: (0, s * tps + j),
                             **feat_spec_kwargs),
                # targets: resident per batch tile.
                pl.BlockSpec((tile_b, 1), lambda s, i, j: (i, 0)),
            ],
            out_specs=(
                pl.BlockSpec((1, tile_b, 1), lambda s, i, j: (s, i, 0)),
                pl.BlockSpec((1, tile_b, 1), lambda s, i, j: (s, i, 0)),
            ),
            scratch_shapes=[
                pltpu.VMEM((tile_b, D), x.dtype),      # inv_temp-scaled inputs
                pltpu.VMEM((tile_b, 1), jnp.float32),  # running max
                pltpu.VMEM((tile_b, 1), jnp.float32),  # running sum-exp
                pltpu.VMEM((tile_b, 1), jnp.float32),  # target logit
            ],
        ),
        compiler_params=pltpu.CompilerParams(
            dimension_semantics=("parallel", "parallel", "arbitrary"),
            vmem_limit_bytes=int(plan.vmem_limit_bytes)),
    )(x, bank_t, t2d)

    # Tiny epilogue: merge the per-split partials (exact logsumexp combine),
    # then mean cross-entropy over the real batch rows.
    lse = jax.nn.logsumexp(lse_part[:, :B, 0], axis=0)
    tgt = jnp.sum(tgt_part[:, :B, 0], axis=0)
    return jnp.mean(lse - tgt)


def _reference_forward(inputs, targets, features, temp=0.05):
    logits = (inputs.astype(jnp.float32) @ features.astype(jnp.float32).T) / temp
    logz = jax.nn.logsumexp(logits, axis=-1)
    tgt = jnp.take_along_axis(logits, targets[:, None], axis=-1)[:, 0]
    return jnp.mean(logz - tgt)


if __name__ == "__main__":
    temp = 0.05
    key = jax.random.PRNGKey(0)

    def make_case(k, B, D, N):
        k_in, k_feat, k_tgt = jax.random.split(k, 3)
        xin = jax.random.normal(k_in, (B, D), dtype=jnp.float32)
        xin = xin / jnp.linalg.norm(xin, axis=-1, keepdims=True)
        # The module registers a zeros bank (degenerate forward); use
        # deterministic normalized random vectors for a meaningful test.
        feat = jax.random.normal(k_feat, (N, D), dtype=jnp.float32)
        feat = feat / jnp.linalg.norm(feat, axis=-1, keepdims=True)
        tgt = jax.random.randint(k_tgt, (B,), 0, N, dtype=jnp.int32)
        return xin, tgt, feat

    k1, k2, k3 = jax.random.split(key, 3)

    # Case 1: prepared-bank path (prepare once, reuse across calls), single
    # N tile, whole batch resident.
    x1, t1, f1 = make_case(k1, B=8, D=32, N=256)
    plan1 = plan_cluster_memory(8, 32, 256)
    bank1 = prepare_feature_bank(f1, plan1)
    loss1 = cluster_memory_forward(x1, t1, temp=temp, plan=plan1, bank_t=bank1)
    loss1 = jax.block_until_ready(loss1)
    ref1 = _reference_forward(x1, t1, f1, temp=temp)
    assert jnp.allclose(loss1, ref1, atol=1e-3, rtol=1e-3), (loss1, ref1)

    # Case 2: convenience path; max_tile_n=128 over N=300 forces the 2-way N
    # split, multi-tile online logsumexp, batch padding and the analytic
    # padded-column correction (including a fully padded tile).
    x2, t2, f2 = make_case(k2, B=10, D=32, N=300)
    loss2 = cluster_memory_forward(x2, t2, f2, temp=temp, max_tile_n=128)
    loss2 = jax.block_until_ready(loss2)
    ref2 = _reference_forward(x2, t2, f2, temp=temp)
    assert jnp.allclose(loss2, ref2, atol=1e-3, rtol=1e-3), (loss2, ref2)

    # Case 3: bf16 streaming of inputs + bank (halves HBM traffic), compared
    # against a reference computed from the same bf16-quantized operands.
    x3, t3, f3 = make_case(k3, B=16, D=64, N=384)
    loss3 = cluster_memory_forward(x3, t3, f3, temp=temp,
                                   stream_dtype=jnp.bfloat16, max_tile_n=128)
    loss3 = jax.block_until_ready(loss3)
    ref3 = _reference_forward(x3.astype(jnp.bfloat16), t3,
                              f3.astype(jnp.bfloat16), temp=temp)
    assert jnp.allclose(loss3, ref3, atol=2e-2, rtol=2e-2), (loss3, ref3)

    print("KERNEL_OK")
</pallas_src>

<mosaic_0001>
module attributes {stable_mosaic.version = 11 : i64} {
  func.func @_cm_ce_kernel(%arg0: i32, %arg1: i32, %arg2: i32, %arg3: memref<8x32xf32, #tpu.memory_space<vmem>>, %arg4: memref<32x256xf32, #tpu.memory_space<vmem>>, %arg5: memref<8x1xi32, #tpu.memory_space<vmem>>, %arg6: memref<1x8x1xf32, #tpu.memory_space<vmem>>, %arg7: memref<1x8x1xf32, #tpu.memory_space<vmem>>, %arg8: memref<8x32xf32, #tpu.memory_space<vmem>>, %arg9: memref<8x1xf32, #tpu.memory_space<vmem>>, %arg10: memref<8x1xf32, #tpu.memory_space<vmem>>, %arg11: memref<8x1xf32, #tpu.memory_space<vmem>>) attributes {dimension_semantics = [#tpu.dimension_semantics<parallel>, #tpu.dimension_semantics<parallel>, #tpu.dimension_semantics<arbitrary>], iteration_bounds = array<i64: 1, 1, 1>, scalar_prefetch = 0 : i64, scratch_operands = 4 : i64, tpu.core_type = #tpu.core_type<tc>, window_params = [{transform_indices = @transform_0, window_bounds = array<i64: 8, 32>}, {transform_indices = @transform_1, window_bounds = array<i64: 32, 256>}, {transform_indices = @transform_2, window_bounds = array<i64: 8, 1>}, {transform_indices = @transform_3, window_bounds = array<i64: 1, 8, 1>}, {transform_indices = @transform_4, window_bounds = array<i64: 1, 8, 1>}]} {
    %c0_i32 = arith.constant 0 : i32
    %0 = arith.cmpi eq, %arg2, %c0_i32 : i32
    %1 = arith.extui %0 : i1 to i32
    %c0_i32_0 = arith.constant 0 : i32
    %2 = arith.cmpi ne, %1, %c0_i32_0 : i32
    scf.if %2 {
      %c0_24 = arith.constant 0 : index
      %c0_25 = arith.constant 0 : index
      %42 = vector.load %arg3[%c0_24, %c0_25] : memref<8x32xf32, #tpu.memory_space<vmem>>, vector<8x32xf32>
      %cst_26 = arith.constant 2.000000e+01 : f32
      %43 = vector.broadcast %cst_26 : f32 to vector<8x32xf32>
      %44 = arith.mulf %42, %43 : vector<8x32xf32>
      %c0_27 = arith.constant 0 : index
      %c0_28 = arith.constant 0 : index
      %45 = vector.load %arg8[%c0_27, %c0_28] : memref<8x32xf32, #tpu.memory_space<vmem>>, vector<8x32xf32>
      tpu.vector_store %arg8[%c0_27, %c0_28], %44 {strides = array<i32>} : memref<8x32xf32, #tpu.memory_space<vmem>>, vector<8x32xf32>,
      %cst_29 = arith.constant -3.000000e+38 : f32
      %46 = vector.broadcast %cst_29 : f32 to vector<8x1xf32>
      %c0_30 = arith.constant 0 : index
      %c0_31 = arith.constant 0 : index
      %47 = vector.load %arg9[%c0_30, %c0_31] : memref<8x1xf32, #tpu.memory_space<vmem>>, vector<8x1xf32>
      tpu.vector_store %arg9[%c0_30, %c0_31], %46 {strides = array<i32>} : memref<8x1xf32, #tpu.memory_space<vmem>>, vector<8x1xf32>,
      %cst_32 = arith.constant 0.000000e+00 : f32
      %48 = vector.broadcast %cst_32 : f32 to vector<8x1xf32>
      %c0_33 = arith.constant 0 : index
      %c0_34 = arith.constant 0 : index
      %49 = vector.load %arg10[%c0_33, %c0_34] : memref<8x1xf32, #tpu.memory_space<vmem>>, vector<8x1xf32>
      tpu.vector_store %arg10[%c0_33, %c0_34], %48 {strides = array<i32>} : memref<8x1xf32, #tpu.memory_space<vmem>>, vector<8x1xf32>,
      %cst_35 = arith.constant 0.000000e+00 : f32
      %50 = vector.broadcast %cst_35 : f32 to vector<8x1xf32>
      %c0_36 = arith.constant 0 : index
      %c0_37 = arith.constant 0 : index
      %51 = vector.load %arg11[%c0_36, %c0_37] : memref<8x1xf32, #tpu.memory_space<vmem>>, vector<8x1xf32>
      tpu.vector_store %arg11[%c0_36, %c0_37], %50 {strides = array<i32>} : memref<8x1xf32, #tpu.memory_space<vmem>>, vector<8x1xf32>,
    } else {
    }
    %c0 = arith.constant 0 : index
    %c0_1 = arith.constant 0 : index
    %3 = vector.load %arg8[%c0, %c0_1] : memref<8x32xf32, #tpu.memory_space<vmem>>, vector<8x32xf32>
    %c0_2 = arith.constant 0 : index
    %c0_3 = arith.constant 0 : index
    %4 = vector.load %arg4[%c0_2, %c0_3] : memref<32x256xf32, #tpu.memory_space<vmem>>, vector<32x256xf32>
    %cst = arith.constant dense<0.000000e+00> : vector<8x256xf32>
    %5 = tpu.matmul %3, %4, %cst {dimension_numbers = #tpu.dot_dimension_numbers<[1], [0], [0], [1], [0, 0, 1, 1], [], []>} : vector<8x32xf32>, vector<32x256xf32>, vector<8x256xf32> -> vector<8x256xf32>
    %c1_i32 = arith.constant 1 : i32
    %6 = arith.muli %arg0, %c1_i32 : i32
    %7 = arith.addi %6, %arg2 : i32
    %c256_i32 = arith.constant 256 : i32
    %8 = arith.muli %7, %c256_i32 : i32
    %9 = tpu.iota {dimensions = array<i32: 1>} : vector<1x256xi32>
    %10 = vector.broadcast %8 : i32 to vector<1x256xi32>
    %11 = arith.addi %10, %9 : vector<1x256xi32>
    %c0_4 = arith.constant 0 : index
    %c0_5 = arith.constant 0 : index
    %12 = vector.load %arg11[%c0_4, %c0_5] : memref<8x1xf32, #tpu.memory_space<vmem>>, vector<8x1xf32>
    %c0_6 = arith.constant 0 : index
    %c0_7 = arith.constant 0 : index
    %13 = vector.load %arg5[%c0_6, %c0_7] : memref<8x1xi32, #tpu.memory_space<vmem>>, vector<8x1xi32>
    %14 = vector.broadcast %11 : vector<1x256xi32> to vector<8x256xi32>
    %15 = vector.broadcast %13 : vector<8x1xi32> to vector<8x256xi32>
    %16 = arith.cmpi eq, %14, %15 : vector<8x256xi32>
    %cst_8 = arith.constant 0.000000e+00 : f32
    %17 = vector.broadcast %cst_8 : f32 to vector<8x256xf32>
    %18 = arith.select %16, %5, %17 : vector<8x256xi1>, vector<8x256xf32>
    %cst_9 = arith.constant dense<0.000000e+00> : vector<8xf32>
    %19 = vector.multi_reduction <add>, %18, %cst_9 [1] : vector<8x256xf32> to vector<8xf32>
    %20 = vector.shape_cast %19 : vector<8xf32> to vector<8x1xf32>
    %21 = arith.addf %12, %20 : vector<8x1xf32>
    %c0_10 = arith.constant 0 : index
    %c0_11 = arith.constant 0 : index
    %22 = vector.load %arg11[%c0_10, %c0_11] : memref<8x1xf32, #tpu.memory_space<vmem>>, vector<8x1xf32>
    tpu.vector_store %arg11[%c0_10, %c0_11], %21 {strides = array<i32>} : memref<8x1xf32, #tpu.memory_space<vmem>>, vector<8x1xf32>,
    %c0_12 = arith.constant 0 : index
    %c0_13 = arith.constant 0 : index
    %23 = vector.load %arg9[%c0_12, %c0_13] : memref<8x1xf32, #tpu.memory_space<vmem>>, vector<8x1xf32>
    %cst_14 = arith.constant dense<0xFF800000> : vector<8xf32>
    %24 = vector.multi_reduction <maximumf>, %5, %cst_14 [1] : vector<8x256xf32> to vector<8xf32>
    %25 = vector.shape_cast %24 : vector<8xf32> to vector<8x1xf32>
    %26 = arith.maximumf %23, %25 : vector<8x1xf32>
    %c0_15 = arith.constant 0 : index
    %c0_16 = arith.constant 0 : index
    %27 = vector.load %arg10[%c0_15, %c0_16] : memref<8x1xf32, #tpu.memory_space<vmem>>, vector<8x1xf32>
    %28 = arith.subf %23, %26 : vector<8x1xf32>
    %29 = math.exp %28 : vector<8x1xf32>
    %30 = arith.mulf %27, %29 : vector<8x1xf32>
    %31 = vector.broadcast %26 : vector<8x1xf32> to vector<8x256xf32>
    %32 = arith.subf %5, %31 : vector<8x256xf32>
    %33 = math.exp %32 : vector<8x256xf32>
    %cst_17 = arith.constant dense<0.000000e+00> : vector<8xf32>
    %34 = vector.multi_reduction <add>, %33, %cst_17 [1] : vector<8x256xf32> to vector<8xf32>
    %35 = vector.shape_cast %34 : vector<8xf32> to vector<8x1xf32>
    %36 = arith.addf %30, %35 : vector<8x1xf32>
    %c0_18 = arith.constant 0 : index
    %c0_19 = arith.constant 0 : index
    %37 = vector.load %arg10[%c0_18, %c0_19] : memref<8x1xf32, #tpu.memory_space<vmem>>, vector<8x1xf32>
    tpu.vector_store %arg10[%c0_18, %c0_19], %36 {strides = array<i32>} : memref<8x1xf32, #tpu.memory_space<vmem>>, vector<8x1xf32>,
    %c0_20 = arith.constant 0 : index
    %c0_21 = arith.constant 0 : index
    %38 = vector.load %arg9[%c0_20, %c0_21] : memref<8x1xf32, #tpu.memory_space<vmem>>, vector<8x1xf32>
    tpu.vector_store %arg9[%c0_20, %c0_21], %26 {strides = array<i32>} : memref<8x1xf32, #tpu.memory_space<vmem>>, vector<8x1xf32>,
    %c0_i32_22 = arith.constant 0 : i32
    %39 = arith.cmpi eq, %arg2, %c0_i32_22 : i32
    %40 = arith.extui %39 : i1 to i32
    %c0_i32_23 = arith.constant 0 : i32
    %41 = arith.cmpi ne, %40, %c0_i32_23 : i32
    scf.if %41 {
      %c256_i32_24 = arith.constant 256 : i32
      %42 = arith.muli %arg0, %c256_i32_24 : i32
      %c256_i32_25 = arith.constant 256 : i32
      %43 = arith.subi %c256_i32_25, %42 : i32
      %c0_i32_26 = arith.constant 0 : i32
      %c256_i32_27 = arith.constant 256 : i32
      %44 = arith.maxsi %c0_i32_26, %43 : i32
      %45 = arith.minsi %c256_i32_27, %44 : i32
      %c256_i32_28 = arith.constant 256 : i32
      %46 = arith.subi %c256_i32_28, %45 : i32
      %47 = arith.sitofp %46 : i32 to f32
      %c0_29 = arith.constant 0 : index
      %c0_30 = arith.constant 0 : index
      %48 = vector.load %arg9[%c0_29, %c0_30] : memref<8x1xf32, #tpu.memory_space<vmem>>, vector<8x1xf32>
      %c0_31 = arith.constant 0 : index
      %c0_32 = arith.constant 0 : index
      %49 = vector.load %arg10[%c0_31, %c0_32] : memref<8x1xf32, #tpu.memory_space<vmem>>, vector<8x1xf32>
      %cst_33 = arith.constant 0.000000e+00 : f32
      %50 = vector.broadcast %cst_33 : f32 to vector<8x1xf32>
      %51 = arith.subf %50, %48 : vector<8x1xf32>
      %cst_34 = arith.constant 6.000000e+01 : f32
      %52 = vector.broadcast %cst_34 : f32 to vector<8x1xf32>
      %53 = arith.minimumf %51, %52 : vector<8x1xf32>
      %54 = math.exp %53 : vector<8x1xf32>
      %55 = vector.broadcast %47 : f32 to vector<8x1xf32>
      %56 = arith.mulf %55, %54 : vector<8x1xf32>
      %57 = arith.subf %49, %56 : vector<8x1xf32>
      %cst_35 = arith.constant 9.99999991E-38 : f32
      %58 = vector.broadcast %cst_35 : f32 to vector<8x1xf32>
      %59 = arith.maximumf %57, %58 : vector<8x1xf32>
      %60 = math.log %59 : vector<8x1xf32>
      %61 = arith.addf %48, %60 : vector<8x1xf32>
      %c0_36 = arith.constant 0 : index
      %c0_37 = arith.constant 0 : index
      %c0_38 = arith.constant 0 : index
      %62 = vector.load %arg6[%c0_36, %c0_37, %c0_38] : memref<1x8x1xf32, #tpu.memory_space<vmem>>, vector<1x8x1xf32>
      %63 = vector.shape_cast %62 : vector<1x8x1xf32> to vector<8x1xf32>
      %64 = vector.shape_cast %61 : vector<8x1xf32> to vector<1x8x1xf32>
      tpu.vector_store %arg6[%c0_36, %c0_37, %c0_38], %64 {strides = array<i32>} : memref<1x8x1xf32, #tpu.memory_space<vmem>>, vector<1x8x1xf32>,
      %c0_39 = arith.constant 0 : index
      %c0_40 = arith.constant 0 : index
      %65 = vector.load %arg11[%c0_39, %c0_40] : memref<8x1xf32, #tpu.memory_space<vmem>>, vector<8x1xf32>
      %c0_41 = arith.constant 0 : index
      %c0_42 = arith.constant 0 : index
      %c0_43 = arith.constant 0 : index
      %66 = vector.load %arg7[%c0_41, %c0_42, %c0_43] : memref<1x8x1xf32, #tpu.memory_space<vmem>>, vector<1x8x1xf32>
      %67 = vector.shape_cast %66 : vector<1x8x1xf32> to vector<8x1xf32>
      %68 = vector.shape_cast %65 : vector<8x1xf32> to vector<1x8x1xf32>
      tpu.vector_store %arg7[%c0_41, %c0_42, %c0_43], %68 {strides = array<i32>} : memref<1x8x1xf32, #tpu.memory_space<vmem>>, vector<1x8x1xf32>,
    } else {
    }
    return
  }
  func.func @transform_0(%arg0: i32, %arg1: i32, %arg2: i32) -> (i32, i32) {
    %c0_i32 = arith.constant 0 : i32
    %c0_i32_0 = arith.constant 0 : i32
    return %arg1, %c0_i32 : i32, i32
  }
  func.func @transform_1(%arg0: i32, %arg1: i32, %arg2: i32) -> (i32, i32) {
    %c1_i32 = arith.constant 1 : i32
    %0 = arith.muli %arg0, %c1_i32 : i32
    %1 = arith.addi %0, %arg2 : i32
    %c0_i32 = arith.constant 0 : i32
    %c0_i32_0 = arith.constant 0 : i32
    return %c0_i32, %1 : i32, i32
  }
  func.func @transform_2(%arg0: i32, %arg1: i32, %arg2: i32) -> (i32, i32) {
    %c0_i32 = arith.constant 0 : i32
    %c0_i32_0 = arith.constant 0 : i32
    return %arg1, %c0_i32 : i32, i32
  }
  func.func @transform_3(%arg0: i32, %arg1: i32, %arg2: i32) -> (i32, i32, i32) {
    %c0_i32 = arith.constant 0 : i32
    %c0_i32_0 = arith.constant 0 : i32
    return %arg0, %arg1, %c0_i32 : i32, i32, i32
  }
  func.func @transform_4(%arg0: i32, %arg1: i32, %arg2: i32) -> (i32, i32, i32) {
    %c0_i32 = arith.constant 0 : i32
    %c0_i32_0 = arith.constant 0 : i32
    return %arg0, %arg1, %c0_i32 : i32, i32, i32
  }
}

</mosaic_0001>

<bundles_post_ra>
// kernel: tpu_custom_call.1
= control target key start
LH: loop header
LB: loop body
LE: loop exit
PB: predicated region body
PF: predicated region fallthrough
CT: control target
= control target key end

     0   :  { %10 = vsyncpa [#allocation7], 0  ;;  %s259_s15 = smov [#allocation6]   ;;  %s313_s0 = inlined_call_operand.vmem [shape: f32[8,32], index: 0, kind: input, shape index: {}]   ;;  %s314_s1 = inlined_call_operand.hbm [shape: f32[32,256], index: 1, kind: input, shape index: {}]   ;;  %s315_s2 = inlined_call_operand.vmem [shape: s32[8,1], index: 2, kind: input, shape index: {}]   ;;  %s316_s3 = inlined_call_operand.vmem [shape: f32[1,8,1], index: 3, kind: output, shape index: {0}]   ;;  %s317_s4 = inlined_call_operand.vmem [shape: f32[1,8,1], index: 4, kind: output, shape index: {1}]  }
   0x1   :  { %s22_s16 = sshll.u32 %s259_s15, 4  ;;  %s23_s16 = int_to_ptr.vmem [resolvable:$true] %s22_s16 }
   0x2   :  { %s245_s17 = scalar_lea.vmem %s23_s16, 1024  ;;  %p250_p1 = scmp.lt.s32.totalorder %s23_s16, %s23_s16 }
   0x3   :  { %p246_p0 = scmp.ne.s32.totalorder %s23_s16, %s245_s17  ;;  %p251_p2 = scmp.lt.s32.totalorder %s245_s17, %s245_s17 }
   0x5   :  { %p252_p3 = por %p251_p2, %p250_p1 }
   0x7   :  { %p253_p4 = pnand %p252_p3, %p246_p0 }
   0x9   :  { %256 = shalt.err (!%p253_p4)
}
   0xa   :  { %s260_s18 = smov 256   ;;  %s261_s19 = smov 16  }
   0xb   :  { %28 = dma.hbm_to_vmem [thread:$0]  %s314_s1, 1024, %s23_s16, [#allocation7], %s260_s18, %s260_s18, %s261_s19  }
   0xc   :  { %257 = dma.done.wait [#allocation7], 1024  }
   0xd   :  { %258 = vsyncadd [#allocation7], 4294966272  ;;  %vm44_vm0 = vcmask 7168   ;;  %v262_v0 = vmov 0.0   ;;  %v263_v1 = vmov 0   ;;  %v56_v2 = vld [vmem:[#allocation6 + $0x38] sm:$0xff]  ;;  %v134_v27 = vlaneseq }
   0xe   :  { %46 = vst.msk [vmem:[#allocation4] sm:$0xff] %vm44_vm0, %v262_v0  ;;  %47 = vst.msk [vmem:[#allocation5] sm:$0xff] %vm44_vm0, %v262_v0  ;;  %125 = vmatprep.mubr.f32.mxu0 %v262_v0  ;;  %226 = vset.pattern.permute.xlu1 %v263_v1  ;;  %v55_v3 = vld [vmem:[#allocation6 + $0x30] sm:$0xff]  ;;  %v54_v4 = vld [vmem:[#allocation6 + $0x28] sm:$0xff]  ;;  %vm42_vm1 = vcmask 261120  }
   0xf   :  { %225 = vset.pattern.permute.xlu0 %v263_v1  ;;  %85 = vmatprep.subr.mxu0 %v56_v2  ;;  %v53_v5 = vld [vmem:[#allocation6 + $0x20] sm:$0xff]  ;;  %v52_v6 = vld [vmem:[#allocation6 + $0x18] sm:$0xff]  ;;  %v51_v8 = vld [vmem:[#allocation6 + $0x10] sm:$0xff]  ;;  %v264_v14 = vmov -3e+38   ;;  %v135_v28 = vand.u32 127, %v134_v27 }
  0x10   :  { %86 = vmatpush1.msra.mxu0 %v55_v3  ;;  %v40_v7 = vld [vmem:[%s313_s0] sm:$0xff]  ;;  %v50_v11 = vld [vmem:[#allocation6 + $0x8] sm:$0xff]  ;;  %45 = vst.msk [vmem:[#allocation3] sm:$0xff] %vm44_vm0, %v264_v14 }
  0x11   :  { %87 = vmatprep.subr.mxu0 %v54_v4  ;;  %v41_v9 = vmul.f32 20.0, %v40_v7  ;;  %v141_v10 = vld [vmem:[%s315_s2] sm:$0xff]  ;;  %v136_v29 = vadd.s32 128, %v135_v28 }
  0x12   :  { %88 = vmatpush1.msra.mxu0 %v53_v5  ;;  %143 = vperm.xlu1 %226, %v141_v10   ;;  %v49_v12 = vld [vmem:[#allocation6] sm:$0xff] }
  0x13   :  { %89 = vmatprep.subr.mxu0 %v52_v6  ;;  %43 = vst.msk [vmem:[#allocation2] sm:$0xff] %vm42_vm1, %v41_v9 }
  0x14   :  { %90 = vmatpush1.msra.mxu0 %v51_v8 }
  0x15   :  { %91 = vmatprep.subr.mxu0 %v50_v11  ;;  %v160_v43 = vld [vmem:[#allocation4] sm:$0xff]  ;;  %v140_v47 = vld [vmem:[#allocation5] sm:$0xff] }
  0x16   :  { %92 = vmatpush1.msra.mxu0 %v49_v12 }
  0x17   :  { %v155_v18 = vld [vmem:[#allocation3] sm:$0xff] }
  0x1a   :  { %v48_v13 = vld [vmem:[#allocation2] sm:$0xff] }
  0x1b   :  { %218 = vmatmul.mubr.msk.f32.vlgmr.msra.gmra.mxu0 %vm42_vm1, %v48_v13 }
  0x8d   :  { %v144_v30 = vpop.permute.xlu1 %143 }
  0x8e   :  { %vm146_vm2 = vcmp.eq.s32.totalorder %v136_v29, %v144_v30  ;;  %vm145_vm3 = vcmp.eq.s32.totalorder %v135_v28, %v144_v30 }
  0xdb   :  { %v127_v15 = vpop.f32.mrf.mxu0 }
  0xdc   :  { %v147_v35 = vsel %vm145_vm3, %v127_v15, 0.0 }
  0xdd   :  { %v129_v16 = vpop.f32.mrf.mxu0 }
  0xde   :  { %v156_v17 = vmax.f32 %v127_v15, %v129_v16  ;;  %v148_v34 = vsel %vm146_vm2, %v129_v16, 0.0 }
  0xdf   :  { %v149_v36 = vadd.f32 %v148_v34, %v147_v35 }
  0xe0   :  { %157 = vmax.xlane.f32.xlu0 %v156_v17 }
 0x169   :  { %v158_v19 = vpop.xlane.xlu0 %157 }
 0x16a   :  { %v159_v20 = vmax.f32 %v155_v18, %v158_v19 }
 0x16c   :  { %v161_v21 = vsub.f32 %v155_v18, %v159_v20  ;;  %181 = vst.msk [vmem:[#allocation3] sm:$0xff] %vm44_vm0, %v159_v20  ;;  %167 = vperm.xlu0 %225, %v159_v20  }
 0x16e   :  { %v162_v38 = vmul.f32 1.442695, %v161_v21 }
 0x173   :  { %v193_v37 = vld [vmem:[#allocation3] sm:$0xff] }
 0x174   :  { %v195_v39 = vsub.f32 0.0, %v193_v37 }
 0x176   :  { %v196_v40 = vmin.f32 %v195_v39, 60.0 }
 0x178   :  { %v197_v41 = vmul.f32 1.442695, %v196_v40 }
 0x1e7   :  { %v168_v22 = vpop.permute.xlu0 %167 }
 0x1e8   :  { %v170_v23 = vsub.f32 %v127_v15, %v168_v22  ;;  %v171_v24 = vsub.f32 %v129_v16, %v168_v22 }
 0x1ea   :  { %v172_v25 = vmul.f32 1.442695, %v170_v23  ;;  %v174_v26 = vmul.f32 1.442695, %v171_v24 }
 0x1ec   :  { %227 = vpow2.f32 %v172_v25 }
 0x1ed   :  { %229 = vpow2.f32 %v174_v26 }
 0x1ee   :  { %231 = vpow2.f32 %v162_v38 }
 0x1ef   :  { %233 = vpow2.f32 %v197_v41 }
 0x1f9   :  { %v228_v31 = vpop.eup %227 }
 0x1fa   :  { %v230_v32 = vpop.eup %229 }
 0x1fb   :  { %v176_v33 = vadd.f32 %v230_v32, %v228_v31  ;;  %v232_v42 = vpop.eup %231 }
 0x1fc   :  { %v164_v44 = vmul.f32 %v232_v42, %v160_v43  ;;  %v234_v50 = vpop.eup %233 }
 0x1fd   :  { %177 = vadd.xlane.f32.xlu1 %v176_v33  ;;  %v200_v51 = vmul.f32 0.0, %v234_v50 }
 0x201   :  { %150 = vadd.xlane.f32.xlu1 %v149_v36 }
 0x286   :  { %v178_v45 = vpop.xlane.xlu1 %177 }
 0x287   :  { %v179_v46 = vadd.f32 %v178_v45, %v164_v44 }
 0x289   :  { %180 = vst.msk [vmem:[#allocation4] sm:$0xff] %vm44_vm0, %v179_v46 }
 0x28a   :  { %v151_v48 = vpop.xlane.xlu1 %150 }
 0x28b   :  { %v152_v49 = vadd.f32 %v151_v48, %v140_v47 }
 0x28d   :  { %154 = vst.msk [vmem:[#allocation5] sm:$0xff] %vm44_vm0, %v152_v49 }
 0x290   :  { %v194_v52 = vld [vmem:[#allocation4] sm:$0xff] }
 0x291   :  { %v201_v53 = vsub.f32 %v194_v52, %v200_v51 }
 0x293   :  { %v202_v54 = vmax.f32 %v201_v53, 1e-37 }
 0x294   :  { %v207_v55 = vld [vmem:[#allocation5] sm:$0xff] }
 0x295   :  { %235 = vlog2.f32 %v202_v54  ;;  %208 = vst.msk [vmem:[%s317_s4] sm:$0xff] %vm44_vm0, %v207_v55 }
 0x2a2   :  { %v236_v56 = vpop.eup %235 }
 0x2a3   :  { %v204_v57 = vmul.f32 0.6931472, %v236_v56 }
 0x2a5   :  { %v205_v58 = vadd.f32 %v204_v57, %v193_v37 }
 0x2a7   :  { %206 = vst.msk [vmem:[%s316_s3] sm:$0xff] %vm44_vm0, %v205_v58 }
 0x2a8   :  { %217 = vsyncpa [#allocation7], 1 }

</bundles_post_ra>
